<compile_context>
chip_gen: v7x
topology: tpu7x:2x2x1
jax: 0.10.0
libtpu: 0.0.40
codegen_flags: <defaults>
</compile_context>

<pallas_src>
import jax
import jax.numpy as jnp
import numpy as np
from jax.experimental import pallas as pl
from jax.experimental.pallas import tpu as pltpu


# ---------------- config (small, TPU-friendly shapes) ----------------
class config:
    VIDEO_FEAT_DIM = 64
    MODEL_DIM = 128
    SEQ_LEN = 8
    N_STIM_TYPES = 4
    DROPOUT = 0.1   # inactive at inference
    BATCH = 2

LN_EPS = 1e-5


# ---------------- kernel ----------------
def _stimulus_encoder_kernel(a_ref, w_ref, nrm_ref, o_ref):
    # a_ref  : (SB, Kp) activation slab [video | event | va | onehot | 1 | 0-pad],
    #          rows are seq-major (row r -> s = r // B, b = r % B)
    # w_ref  : (Kp, D)  stacked weights [Wv; We; Wa; Emb; b_sum; 0-pad]
    # nrm_ref: (2, D)   [gamma; beta]
    # o_ref  : (SB, D)
    fused = jnp.dot(a_ref[...], w_ref[...],
                    preferred_element_type=jnp.float32)           # (SB, D), one MXU op

    # LayerNorm over D with independent reductions (overlap in the XLU):
    #   var = E[x^2] - mean^2
    d = fused.shape[-1]
    inv_d = 1.0 / d
    s1 = jnp.sum(fused, axis=-1, keepdims=True)
    s2 = jnp.sum(fused * fused, axis=-1, keepdims=True)
    mean = s1 * inv_d
    var = s2 * inv_d - mean * mean
    normed = (fused - mean) * jax.lax.rsqrt(var + LN_EPS)

    out = normed * nrm_ref[0:1, :] + nrm_ref[1:2, :]
    # Dropout: identity in eval mode.
    o_ref[...] = out.astype(o_ref.dtype)


# ---------------- wrapper ----------------
@jax.jit
def stimulus_encoder_forward(params, video_features, event_type, va_values, stim_type):
    B, S, Dv = video_features.shape
    D = params["wv"].shape[1]
    N = params["emb"].shape[0]
    SB = S * B
    K = 2 + 2 + N                       # event | va | onehot
    Kt = Dv + K + 1                     # + ones column (absorbs the summed bias)
    Kp = ((Kt + 7) // 8) * 8            # pad contraction dim to f32 sublane multiple

    # --- cheap wrapper-side operand prep (all tiny tensors) ---
    # Video rows already seq-major: row r -> (s = r // B, b = r % B).
    video_smajor = jnp.transpose(video_features, (1, 0, 2)).reshape(SB, Dv)
    onehot = jax.nn.one_hot(stim_type, N, dtype=jnp.float32)          # (B, N)
    small = jnp.concatenate([event_type.astype(jnp.float32),
                             va_values.astype(jnp.float32),
                             onehot], axis=1)                         # (B, K)
    small_smajor = jnp.tile(small, (S, 1))                            # (SB, K), seq-major
    act = jnp.concatenate(
        [video_smajor, small_smajor,
         jnp.ones((SB, 1), jnp.float32),
         jnp.zeros((SB, Kp - Kt), jnp.float32)], axis=1)              # (SB, Kp)

    b_sum = params["bv"] + params["be"] + params["ba"]                # (1, D)
    w = jnp.concatenate(
        [params["wv"], params["we"], params["wa"], params["emb"],
         b_sum, jnp.zeros((Kp - Kt, D), jnp.float32)], axis=0)        # (Kp, D)
    nrm = jnp.concatenate([params["gamma"], params["beta"]], axis=0)  # (2, D)

    vmem = pltpu.MemorySpace.VMEM
    out2d = pl.pallas_call(
        _stimulus_encoder_kernel,
        out_shape=jax.ShapeDtypeStruct((SB, D), jnp.float32),
        in_specs=[pl.BlockSpec(memory_space=vmem),
                  pl.BlockSpec(memory_space=vmem),
                  pl.BlockSpec(memory_space=vmem)],
        out_specs=pl.BlockSpec(memory_space=vmem),
    )(act, w, nrm)

    # Rows are seq-major -> free contiguous reshape; equals PyTorch
    # fused_stimulus.transpose(0, 1).
    return out2d.reshape(S, B, D)


# ---------------- deterministic parameter init ----------------
def init_params(key):
    D, Dv, N = config.MODEL_DIM, config.VIDEO_FEAT_DIM, config.N_STIM_TYPES
    ks = jax.random.split(key, 8)
    scale = 0.02
    return {
        "wv": (scale * jax.random.normal(ks[0], (Dv, D))).astype(jnp.float32),
        "bv": (scale * jax.random.normal(ks[1], (1, D))).astype(jnp.float32),
        "we": (scale * jax.random.normal(ks[2], (2, D))).astype(jnp.float32),
        "be": (scale * jax.random.normal(ks[3], (1, D))).astype(jnp.float32),
        "wa": (scale * jax.random.normal(ks[4], (2, D))).astype(jnp.float32),
        "ba": (scale * jax.random.normal(ks[5], (1, D))).astype(jnp.float32),
        "emb": (scale * jax.random.normal(ks[6], (N, D))).astype(jnp.float32),
        "gamma": jnp.ones((1, D), jnp.float32),
        "beta": jnp.zeros((1, D), jnp.float32),
    }


# ---------------- pure-JAX reference (for correctness check) ----------------
def reference_forward(params, video_features, event_type, va_values, stim_type):
    video_enc = video_features @ params["wv"] + params["bv"]            # (B,S,D)
    ev_enc = event_type @ params["we"] + params["be"]                   # (B,D)
    va_enc = va_values @ params["wa"] + params["ba"]                    # (B,D)
    stim_enc = params["emb"][stim_type]                                 # (B,D)
    fused = (video_enc + ev_enc[:, None, :] + va_enc[:, None, :]
             + stim_enc[:, None, :])
    mean = fused.mean(-1, keepdims=True)
    var = ((fused - mean) ** 2).mean(-1, keepdims=True)
    normed = (fused - mean) / jnp.sqrt(var + LN_EPS)
    out = normed * params["gamma"] + params["beta"]
    return jnp.transpose(out, (1, 0, 2))                                # (S,B,D)


if __name__ == "__main__":
    key = jax.random.PRNGKey(0)
    k_p, k_v, k_e, k_a, k_s = jax.random.split(key, 5)

    params = init_params(k_p)

    B, S, Dv = config.BATCH, config.SEQ_LEN, config.VIDEO_FEAT_DIM
    video_features = jax.random.normal(k_v, (B, S, Dv), jnp.float32)
    event_type = jax.random.normal(k_e, (B, 2), jnp.float32)
    va_values = jax.random.normal(k_a, (B, 2), jnp.float32)
    stim_type = jax.random.randint(k_s, (B,), 0, config.N_STIM_TYPES, jnp.int32)

    out = stimulus_encoder_forward(params, video_features, event_type,
                                   va_values, stim_type)
    out = jax.block_until_ready(out)

    ref = reference_forward(params, video_features, event_type, va_values, stim_type)
    assert out.shape == (S, B, config.MODEL_DIM), out.shape
    np.testing.assert_allclose(np.asarray(out), np.asarray(ref),
                               rtol=1e-4, atol=1e-4)
    print("KERNEL_OK")
</pallas_src>

<mosaic_0001>
module attributes {stable_mosaic.version = 11 : i64} {
  func.func @_stimulus_encoder_kernel(%arg0: memref<16x80xf32, #tpu.memory_space<vmem>>, %arg1: memref<80x128xf32, #tpu.memory_space<vmem>>, %arg2: memref<2x128xf32, #tpu.memory_space<vmem>>, %arg3: memref<16x128xf32, #tpu.memory_space<vmem>>) attributes {dimension_semantics = [], scalar_prefetch = 0 : i64, scratch_operands = 0 : i64, tpu.core_type = #tpu.core_type<tc>} {
    %c0 = arith.constant 0 : index
    %c0_0 = arith.constant 0 : index
    %0 = vector.load %arg0[%c0, %c0_0] : memref<16x80xf32, #tpu.memory_space<vmem>>, vector<16x80xf32>
    %c0_1 = arith.constant 0 : index
    %c0_2 = arith.constant 0 : index
    %1 = vector.load %arg1[%c0_1, %c0_2] : memref<80x128xf32, #tpu.memory_space<vmem>>, vector<80x128xf32>
    %cst = arith.constant dense<0.000000e+00> : vector<16x128xf32>
    %2 = tpu.matmul %0, %1, %cst {dimension_numbers = #tpu.dot_dimension_numbers<[1], [0], [0], [1], [0, 0, 1, 1], [], []>} : vector<16x80xf32>, vector<80x128xf32>, vector<16x128xf32> -> vector<16x128xf32>
    %cst_3 = arith.constant dense<0.000000e+00> : vector<16xf32>
    %3 = vector.multi_reduction <add>, %2, %cst_3 [1] : vector<16x128xf32> to vector<16xf32>
    %4 = vector.shape_cast %3 : vector<16xf32> to vector<16x1xf32>
    %5 = arith.mulf %2, %2 : vector<16x128xf32>
    %cst_4 = arith.constant dense<0.000000e+00> : vector<16xf32>
    %6 = vector.multi_reduction <add>, %5, %cst_4 [1] : vector<16x128xf32> to vector<16xf32>
    %7 = vector.shape_cast %6 : vector<16xf32> to vector<16x1xf32>
    %cst_5 = arith.constant 7.812500e-03 : f32
    %8 = vector.broadcast %cst_5 : f32 to vector<16x1xf32>
    %9 = arith.mulf %4, %8 : vector<16x1xf32>
    %cst_6 = arith.constant 7.812500e-03 : f32
    %10 = vector.broadcast %cst_6 : f32 to vector<16x1xf32>
    %11 = arith.mulf %7, %10 : vector<16x1xf32>
    %12 = arith.mulf %9, %9 : vector<16x1xf32>
    %13 = arith.subf %11, %12 : vector<16x1xf32>
    %14 = vector.broadcast %9 : vector<16x1xf32> to vector<16x128xf32>
    %15 = arith.subf %2, %14 : vector<16x128xf32>
    %cst_7 = arith.constant 9.99999974E-6 : f32
    %16 = vector.broadcast %cst_7 : f32 to vector<16x1xf32>
    %17 = arith.addf %13, %16 : vector<16x1xf32>
    %18 = math.rsqrt %17 : vector<16x1xf32>
    %19 = vector.broadcast %18 : vector<16x1xf32> to vector<16x128xf32>
    %20 = arith.mulf %15, %19 : vector<16x128xf32>
    %c0_8 = arith.constant 0 : index
    %c0_9 = arith.constant 0 : index
    %21 = vector.load %arg2[%c0_8, %c0_9] : memref<2x128xf32, #tpu.memory_space<vmem>>, vector<1x128xf32>
    %22 = vector.broadcast %21 : vector<1x128xf32> to vector<16x128xf32>
    %23 = arith.mulf %20, %22 : vector<16x128xf32>
    %c1 = arith.constant 1 : index
    %c0_10 = arith.constant 0 : index
    %24 = vector.load %arg2[%c1, %c0_10] : memref<2x128xf32, #tpu.memory_space<vmem>>, vector<1x128xf32>
    %25 = vector.broadcast %24 : vector<1x128xf32> to vector<16x128xf32>
    %26 = arith.addf %23, %25 : vector<16x128xf32>
    %c0_11 = arith.constant 0 : index
    %c0_12 = arith.constant 0 : index
    %27 = vector.load %arg3[%c0_11, %c0_12] : memref<16x128xf32, #tpu.memory_space<vmem>>, vector<16x128xf32>
    tpu.vector_store %arg3[%c0_11, %c0_12], %26 {strides = array<i32>} : memref<16x128xf32, #tpu.memory_space<vmem>>, vector<16x128xf32>,
    return
  }
}

</mosaic_0001>

<bundles_post_ra>
// kernel: stimulus_encoder_forward.1
= control target key start
LH: loop header
LB: loop body
LE: loop exit
PB: predicated region body
PF: predicated region fallthrough
CT: control target
= control target key end

     0   :  { %vm27_vm0 = vcmask 654336   ;;  %s336_s0 = inlined_call_operand.vmem [shape: f32[16,80], index: 0, kind: input, shape index: {}]   ;;  %s337_s1 = inlined_call_operand.vmem [shape: f32[80,128], index: 1, kind: input, shape index: {}]   ;;  %s338_s2 = inlined_call_operand.vmem [shape: f32[2,128], index: 2, kind: input, shape index: {}]   ;;  %s339_s3 = inlined_call_operand.hbm [shape: f32[16,128], index: 3, kind: output, shape index: {}]  }
   0x1   :  { %v17_v0 = vld [vmem:[%s337_s1] sm:$0xff]  ;;  %v18_v1 = vld [vmem:[%s337_s1 + $0x8] sm:$0xff]  ;;  %v19_v2 = vld [vmem:[%s337_s1 + $0x10] sm:$0xff] }
   0x2   :  { %v206_v3 = vpack.c.bf16 %v18_v1, %v17_v0  ;;  %v20_v4 = vld [vmem:[%s337_s1 + $0x18] sm:$0xff]  ;;  %v21_v6 = vld [vmem:[%s337_s1 + $0x20] sm:$0xff]  ;;  %v22_v7 = vld [vmem:[%s337_s1 + $0x28] sm:$0xff] }
   0x3   :  { %v210_v5 = vpack.c.bf16 %v20_v4, %v19_v2  ;;  %v15_v8 = vld [vmem:[%s336_s0] sm:$0xff] }
   0x4   :  { %207 = vmatprep.subr.bf16.mxu0 %v206_v3  ;;  %203 = vmatprep.mubr.msk.f32.mxu0 %vm27_vm0, %v15_v8 }
   0x5   :  { %209 = vmatpush3.bf16.msra.mxu0 %v206_v3 }
   0x6   :  { %8 = vsyncpa [#allocation3], 0  ;;  %211 = vmatprep.subr.bf16.mxu0 %v210_v5  ;;  %v214_v9 = vpack.c.bf16 %v22_v7, %v21_v6  ;;  %v23_v10 = vld [vmem:[%s337_s1 + $0x30] sm:$0xff]  ;;  %v24_v11 = vld [vmem:[%s337_s1 + $0x38] sm:$0xff]  ;;  %s257_s11 = smov [#allocation2]  }
   0x7   :  { %v218_v12 = vpack.c.bf16 %v24_v11, %v23_v10  ;;  %v25_v13 = vld [vmem:[%s337_s1 + $0x40] sm:$0xff]  ;;  %v26_v14 = vld [vmem:[%s337_s1 + $0x48] sm:$0xff]  ;;  %s156_s12 = sshll.u32 %s257_s11, 4  ;;  %s157_s12 = int_to_ptr.vmem [resolvable:$true] %s156_s12 }
   0x8   :  { %v222_v15 = vpack.c.bf16 %v26_v14, %v25_v13  ;;  %v16_v16 = vld [vmem:[%s336_s0 + $0x8] sm:$0xff]  ;;  %v169_v37 = vld [vmem:[%s338_s2] ss:$0 sm:$0xff]  ;;  %v170_v39 = vld [vmem:[%s338_s2 + $0x1] ss:$0 sm:$0xff]  ;;  %s233_s13 = scalar_lea.vmem %s157_s12, 256  ;;  %p238_p1 = scmp.lt.s32.totalorder %s157_s12, %s157_s12 }
   0x9   :  { %213 = vmatpush3.bf16.msra.mxu0 %v210_v5  ;;  %p234_p0 = scmp.ne.s32.totalorder %s157_s12, %s233_s13  ;;  %p239_p2 = scmp.lt.s32.totalorder %s233_s13, %s233_s13 }
   0xa   :  { %215 = vmatprep.subr.bf16.mxu0 %v214_v9 }
   0xb   :  { %p240_p3 = por %p239_p2, %p238_p1 }
   0xd   :  { %217 = vmatpush3.bf16.msra.mxu0 %v214_v9  ;;  %p241_p4 = pnand %p240_p3, %p234_p0 }
   0xe   :  { %219 = vmatprep.subr.bf16.mxu0 %v218_v12 }
  0x11   :  { %221 = vmatpush3.bf16.msra.mxu0 %v218_v12 }
  0x12   :  { %223 = vmatprep.subr.bf16.mxu0 %v222_v15 }
  0x15   :  { %225 = vmatpush3.bf16.msra.mxu0 %v222_v15 }
  0x18   :  { %204 = vmatmul.mubr.msk.f32.vlgmr.msra.gmra.mrb[0].mxu0 %vm27_vm0, %v16_v16 }
  0xeb   :  { %v205_v17 = vpop.f32.mrb[0].mxu0 }
  0xec   :  { %v100_v18 = vpop.f32.mrb[1].mxu0  ;;  %v114_v20 = vmul.f32 %v205_v17, %v205_v17 }
  0xed   :  { %109 = vadd.xlane.f32.xlu0 %v100_v18  ;;  %v113_v19 = vmul.f32 %v100_v18, %v100_v18 }
  0xef   :  { %115 = vadd.xlane.f32.xlu1 %v113_v19 }
  0xf1   :  { %111 = vadd.xlane.f32.xlu0 %v205_v17 }
  0xf3   :  { %117 = vadd.xlane.f32.xlu1 %v114_v20 }
 0x17a   :  { %v110_v21 = vpop.xlane.xlu0 %109 }
 0x17b   :  { %v119_v22 = vmul.f32 0.0078125, %v110_v21 }
 0x17c   :  { %v116_v23 = vpop.xlane.xlu1 %115 }
 0x17d   :  { %v123_v24 = vmul.f32 %v119_v22, %v119_v22  ;;  %v121_v25 = vmul.f32 0.0078125, %v116_v23  ;;  %v127_v35 = vsub.f32 %v100_v18, %v119_v22 }
 0x17e   :  { %v112_v26 = vpop.xlane.xlu0 %111 }
 0x17f   :  { %v125_v27 = vsub.f32 %v121_v25, %v123_v24  ;;  %v120_v28 = vmul.f32 0.0078125, %v112_v26 }
 0x180   :  { %v118_v29 = vpop.xlane.xlu1 %117 }
 0x181   :  { %v129_v30 = vadd.f32 1e-05, %v125_v27  ;;  %v124_v31 = vmul.f32 %v120_v28, %v120_v28  ;;  %v122_v32 = vmul.f32 0.0078125, %v118_v29  ;;  %v128_v40 = vsub.f32 %v205_v17, %v120_v28 }
 0x183   :  { %229 = vrsqrt.f32 %v129_v30  ;;  %v126_v33 = vsub.f32 %v122_v32, %v124_v31 }
 0x185   :  { %v130_v34 = vadd.f32 1e-05, %v126_v33 }
 0x187   :  { %231 = vrsqrt.f32 %v130_v34 }
 0x18d   :  { %v230_v36 = vpop.eup %229 }
 0x18e   :  { %v133_v38 = vmul.f32 %v230_v36, %v127_v35 }
 0x190   :  { %v140_v41 = vmul.f32 %v169_v37, %v133_v38 }
 0x191   :  { %v232_v42 = vpop.eup %231 }
 0x192   :  { %v134_v43 = vmul.f32 %v232_v42, %v128_v40  ;;  %v147_v44 = vadd.f32 %v170_v39, %v140_v41 }
 0x194   :  { %v141_v45 = vmul.f32 %v169_v37, %v134_v43  ;;  %149 = vst [vmem:[#allocation2] sm:$0xff] %v147_v44 }
 0x196   :  { %v148_v46 = vadd.f32 %v170_v39, %v141_v45 }
 0x198   :  { %150 = vst [vmem:[#allocation2 + $0x8] sm:$0xff] %v148_v46 }
 0x199   :  { %244 = shalt.err (!%p241_p4)
}
 0x19a   :  { %s245_s15 = scalar_lea.hbm %s339_s3, 256 }
 0x19b   :  { %p246_p5 = scmp.ne.s32.totalorder %s339_s3, %s245_s15  ;;  %p249_p6 = scmp.lt.u32.totalorder %s245_s15, %s339_s3 }
 0x19d   :  { %p251_p7 = pnand %p249_p6, %p246_p5 }
 0x19f   :  { %254 = shalt.err (!%p251_p7)
}
 0x1a0   :  { %s258_s20 = smov 128   ;;  %s259_s21 = smov 8  }
 0x1a1   :  { %162 = dma.vmem_to_hbm [thread:$0]  %s157_s12, 256, %s339_s3, [#allocation3], %s258_s20, %s258_s20, %s259_s21  }
 0x1a2   :  { %255 = dma.done.wait [#allocation3], 256  }
 0x1a3   :  { %256 = vsyncadd [#allocation3], 4294967040 }
 0x1a4   :  { %166 = vsyncpa [#allocation3], 1 }

</bundles_post_ra>
